<compile_context>
chip_gen: v7x
topology: tpu7x:2x2x1
jax: 0.10.0
libtpu: 0.0.40
codegen_flags: <defaults>
</compile_context>

<pallas_src>
import math

import jax
import jax.numpy as jnp
from jax.experimental import pallas as pl
from jax.experimental.pallas import tpu as pltpu


# ---------------------------------------------------------------------------
# Kernel (shared by the lane-packed and plain layouts; only operand shapes
# differ — the wrapper does the layout plumbing).
# ---------------------------------------------------------------------------
def _embed_kernel(x_ref, w_ref, pb_ref, out_ref):
    """out = x @ W + pos_bias, f32 accumulation.

    Packed layout: x (TMp, G*D_in), W (G*D_in, 128), pb/out (TMp, 128).
    Plain  layout: x (TM,  D_in),  W (D_in,  H),    pb/out (TM,  H).
    """
    emb = jnp.dot(x_ref[...], w_ref[...], preferred_element_type=jnp.float32)
    out_ref[...] = (emb + pb_ref[...]).astype(out_ref.dtype)


# ---------------------------------------------------------------------------
# Helpers
# ---------------------------------------------------------------------------
def positional_encoding(seq_len: int, hid_dim: int) -> jnp.ndarray:
    """Matches TransformerBlock.positional_encoding; returns (seq_len, hid_dim)."""
    position = jnp.arange(0, seq_len, dtype=jnp.float32)[:, None]            # (S, 1)
    div_term = jnp.exp(
        jnp.arange(0, hid_dim, 2, dtype=jnp.float32) * (-math.log(10000.0) / hid_dim)
    )
    sin = jnp.sin(position * div_term)
    cos = jnp.cos(position * div_term)
    pos = jnp.zeros((seq_len, hid_dim), dtype=jnp.float32)
    pos = pos.at[:, 0::2].set(sin)
    pos = pos.at[:, 1::2].set(cos[:, : hid_dim // 2])
    return pos


def _round_up(x: int, m: int) -> int:
    return ((x + m - 1) // m) * m


def _cdiv(a: int, b: int) -> int:
    return -(-a // b)


def _try_plan(B, S, D_in, H, G, target_rows, vmem_budget):
    """Pick (padded seq length, rows per tile) for the layout with row-group G.

    Returns None if the lane-packed layout (G > 1) cannot be realised inside
    the VMEM budget; the caller then falls back to the plain (G == 1) layout.
    """
    A = max(8, G)                          # per-batch row alignment (G|S_A and 8|S_A)
    S_A = _round_up(S, A)
    P = S_A                                # positional-table period (rows)
    M = B * S_A
    per_row = 4 * (2 * D_in + 4 * H)       # dbl-buffered x & out tiles + pos tile
    w_bytes = 2 * 4 * (G * D_in) * (G * H)
    budget_rows = max(0, (vmem_budget - w_bytes) // per_row)
    # Packed row-tile (TM/G sublanes) must be a multiple of 8 or span the array.
    k_align = (8 * G) // math.gcd(8 * G, P)
    k_cap = min(B, budget_rows // P)
    if k_cap >= k_align:
        k = min(k_cap, max(k_align, target_rows // P))
        k = max(k_align, (k // k_align) * k_align)
        # Keep >= 2 grid steps when affordable (v7x shards the parallel axis
        # over its 2 TensorCores; single-step grids idle one core).
        if B // k < 2 <= B // k_align:
            k = max(k_align, ((B // 2) // k_align) * k_align)
        return S_A, k * P
    if G > 1:
        # Aligned multi-tile layout not reachable (small batch): a single
        # full-extent block is fine if it fits VMEM, else use plain layout.
        return (S_A, M) if M <= budget_rows else None
    # G == 1 last resort (huge D_in * S): one period of rows per step.
    # TODO(synk): add a K grid axis + VMEM accumulator for very large D_in.
    return S_A, min(M, P)


# ---------------------------------------------------------------------------
# Wrapper
# ---------------------------------------------------------------------------
def transformer_block_forward(
    src,
    weight,
    bias,
    hid_dim: int,
    *,
    out_dtype=jnp.float32,
    target_rows: int = 1024,
    vmem_budget_bytes: int = 10 * 2**20,   # stays under v5e's 16 MiB scoped default
):
    """src: (B, S, D_in); weight: (D_in, H) (nn.Linear weight pre-transposed);
    bias: (H,).  Returns (B, S, H) in out_dtype (f32 by default)."""
    B, S, D_in = src.shape
    H = int(hid_dim)
    scale = math.sqrt(float(H))

    src = src.astype(jnp.float32)
    w_scaled = weight.astype(jnp.float32) * scale                      # (D_in, H)
    pos_bias = positional_encoding(S, H) + bias.astype(jnp.float32)[None, :] * scale

    # ---- layout / tile planning --------------------------------------------
    # Lane-packed layout only when H divides 128 and the block-expanded weight
    # stays small (<= 2 MiB); otherwise plain layout (correct, H-wide stores).
    packed_ok = (
        H <= 128 and 128 % H == 0 and 4 * (128 // H) * D_in * 128 <= (2 << 20)
    )
    plan, G = None, 1
    if packed_ok:
        G = 128 // H
        plan = _try_plan(B, S, D_in, H, G, target_rows, vmem_budget_bytes)
    if plan is None:
        G = 1
        plan = _try_plan(B, S, D_in, H, 1, target_rows, vmem_budget_bytes)
    S_A, TM = plan

    if S_A != S:
        # TODO(synk): when S is not a multiple of the row alignment we pay one
        # extra HBM pass for the pad and one for the final slice; a masked-tail
        # kernel variant would remove them (they vanish when S is aligned).
        src = jnp.pad(src, ((0, 0), (0, S_A - S), (0, 0)))
        pos_period = jnp.pad(pos_bias, ((0, S_A - S), (0, 0)))
    else:
        pos_period = pos_bias

    P = S_A
    M = B * S_A
    Mp, TMp = M // G, TM // G
    OUT_L = G * H                                   # 128 when packed, H otherwise

    # Free (row-major) reshape into the packed view.
    x2d = src.reshape(M, D_in).reshape(Mp, G * D_in)

    if G > 1:
        # Block-diagonal expansion: Wexp[g*D_in+d, f*H+h] = W[d,h]*scale * (f==g)
        eye = jnp.eye(G, dtype=jnp.float32)
        w_in = jnp.einsum("gf,dh->gdfh", eye, w_scaled).reshape(G * D_in, OUT_L)
    else:
        w_in = w_scaled

    # Grid-invariant pos+bias tile: exactly TM rows (P | TM by construction).
    pos_tile = jnp.tile(pos_period, (TM // P, 1)).reshape(TMp, OUT_L)

    n_tiles = _cdiv(Mp, TMp)

    out2d = pl.pallas_call(
        _embed_kernel,
        out_shape=jax.ShapeDtypeStruct((Mp, OUT_L), out_dtype),
        grid_spec=pltpu.PrefetchScalarGridSpec(
            num_scalar_prefetch=0,
            grid=(n_tiles,),
            in_specs=[
                pl.BlockSpec((TMp, G * D_in), lambda i: (i, 0)),    # row tile of src
                pl.BlockSpec((G * D_in, OUT_L), lambda i: (0, 0)),  # expanded weight (invariant)
                pl.BlockSpec((TMp, OUT_L), lambda i: (0, 0)),       # pos+bias tile (invariant)
            ],
            out_specs=pl.BlockSpec((TMp, OUT_L), lambda i: (i, 0)),
        ),
        compiler_params=pltpu.CompilerParams(
            dimension_semantics=("parallel",),
        ),
    )(x2d, w_in, pos_tile)

    out = out2d.reshape(M, H).reshape(B, S_A, H)    # free, row-major
    if S_A != S:
        out = out[:, :S, :]
    return out


def reference_forward(src, weight, bias, hid_dim: int):
    """Pure-JAX reference mirroring the PyTorch forward (eval-mode dropout)."""
    pos = positional_encoding(src.shape[1], hid_dim)
    emb = jnp.einsum("bsd,dh->bsh", src.astype(jnp.float32),
                     weight.astype(jnp.float32)) + bias
    return emb * math.sqrt(hid_dim) + pos[None, :, :]


# ---------------------------------------------------------------------------
# Demo / self-test
# ---------------------------------------------------------------------------
if __name__ == "__main__":
    def run_case(key, batch, seq_len, input_dim, hid_dim):
        k_src, k_w, k_b = jax.random.split(key, 3)
        src = jax.random.normal(k_src, (batch, seq_len, input_dim), dtype=jnp.float32)
        # nn.Linear(input_dim, hid_dim): weight stored pre-transposed (D_in, H).
        bound = 1.0 / math.sqrt(input_dim)
        weight = jax.random.uniform(
            k_w, (input_dim, hid_dim), minval=-bound, maxval=bound, dtype=jnp.float32
        )
        bias = jax.random.uniform(
            k_b, (hid_dim,), minval=-bound, maxval=bound, dtype=jnp.float32
        )

        out = jax.block_until_ready(
            transformer_block_forward(src, weight, bias, hid_dim)
        )
        ref = jax.block_until_ready(reference_forward(src, weight, bias, hid_dim))
        assert out.shape == (batch, seq_len, hid_dim), out.shape
        assert jnp.allclose(out, ref, atol=1e-5, rtol=1e-5), (
            f"mismatch vs reference at shapes {(batch, seq_len, input_dim, hid_dim)}"
        )

    key = jax.random.PRNGKey(0)
    keys = jax.random.split(key, 4)

    # Module defaults (input_dim=1, hid_dim=16, seq_length=101): lane-packed
    # layout, single full-extent block (batch < alignment), seq pad + slice.
    run_case(keys[0], batch=2, seq_len=101, input_dim=1, hid_dim=16)
    # Aligned seq (104 = 8*13): zero-copy path, TM = 8 batches = 832 rows,
    # 2 grid steps with grid-invariant pos tile.
    run_case(keys[1], batch=16, seq_len=104, input_dim=1, hid_dim=16)
    # input_dim > 1 packed matmul + a partial last row tile (5 batches, 2/tile).
    run_case(keys[2], batch=5, seq_len=128, input_dim=4, hid_dim=16)
    # hid_dim that does not divide 128: plain (unpacked) fallback layout.
    run_case(keys[3], batch=2, seq_len=16, input_dim=3, hid_dim=24)

    print("KERNEL_OK")
</pallas_src>

<mosaic_0001>
module attributes {stable_mosaic.version = 11 : i64} {
  func.func @_embed_kernel(%arg0: i32, %arg1: memref<26x8xf32, #tpu.memory_space<vmem>>, %arg2: memref<8x128xf32, #tpu.memory_space<vmem>>, %arg3: memref<26x128xf32, #tpu.memory_space<vmem>>, %arg4: memref<26x128xf32, #tpu.memory_space<vmem>>) attributes {dimension_semantics = [#tpu.dimension_semantics<parallel>], iteration_bounds = array<i64: 1>, scalar_prefetch = 0 : i64, scratch_operands = 0 : i64, tpu.core_type = #tpu.core_type<tc>, window_params = [{transform_indices = @transform_0, window_bounds = array<i64: 26, 8>}, {pipeline_mode = #tpu.pipeline_mode<synchronous>, transform_indices = @transform_1, window_bounds = array<i64: 8, 128>}, {pipeline_mode = #tpu.pipeline_mode<synchronous>, transform_indices = @transform_2, window_bounds = array<i64: 26, 128>}, {transform_indices = @transform_3, window_bounds = array<i64: 26, 128>}]} {
    %c0 = arith.constant 0 : index
    %c0_0 = arith.constant 0 : index
    %0 = vector.load %arg1[%c0, %c0_0] : memref<26x8xf32, #tpu.memory_space<vmem>>, vector<26x8xf32>
    %c0_1 = arith.constant 0 : index
    %c0_2 = arith.constant 0 : index
    %1 = vector.load %arg2[%c0_1, %c0_2] : memref<8x128xf32, #tpu.memory_space<vmem>>, vector<8x128xf32>
    %cst = arith.constant dense<0.000000e+00> : vector<26x128xf32>
    %2 = tpu.matmul %0, %1, %cst {dimension_numbers = #tpu.dot_dimension_numbers<[1], [0], [0], [1], [0, 0, 1, 1], [], []>} : vector<26x8xf32>, vector<8x128xf32>, vector<26x128xf32> -> vector<26x128xf32>
    %c0_3 = arith.constant 0 : index
    %c0_4 = arith.constant 0 : index
    %3 = vector.load %arg3[%c0_3, %c0_4] : memref<26x128xf32, #tpu.memory_space<vmem>>, vector<26x128xf32>
    %4 = arith.addf %2, %3 : vector<26x128xf32>
    %c0_5 = arith.constant 0 : index
    %c0_6 = arith.constant 0 : index
    %5 = vector.load %arg4[%c0_5, %c0_6] : memref<26x128xf32, #tpu.memory_space<vmem>>, vector<26x128xf32>
    tpu.vector_store %arg4[%c0_5, %c0_6], %4 {strides = array<i32>} : memref<26x128xf32, #tpu.memory_space<vmem>>, vector<26x128xf32>,
    return
  }
  func.func @transform_0(%arg0: i32) -> (i32, i32) {
    %c0_i32 = arith.constant 0 : i32
    %c0_i32_0 = arith.constant 0 : i32
    return %arg0, %c0_i32 : i32, i32
  }
  func.func @transform_1(%arg0: i32) -> (i32, i32) {
    %c0_i32 = arith.constant 0 : i32
    %c0_i32_0 = arith.constant 0 : i32
    %c0_i32_1 = arith.constant 0 : i32
    return %c0_i32, %c0_i32_0 : i32, i32
  }
  func.func @transform_2(%arg0: i32) -> (i32, i32) {
    %c0_i32 = arith.constant 0 : i32
    %c0_i32_0 = arith.constant 0 : i32
    %c0_i32_1 = arith.constant 0 : i32
    return %c0_i32, %c0_i32_0 : i32, i32
  }
  func.func @transform_3(%arg0: i32) -> (i32, i32) {
    %c0_i32 = arith.constant 0 : i32
    %c0_i32_0 = arith.constant 0 : i32
    return %arg0, %c0_i32 : i32, i32
  }
}

</mosaic_0001>

<bundles_post_ra>
// kernel: tpu_custom_call.1
= control target key start
LH: loop header
LB: loop body
LE: loop exit
PB: predicated region body
PF: predicated region fallthrough
CT: control target
= control target key end

     0   :  { %vm24_vm0 = vcmask 64512   ;;  %s250_s0 = inlined_call_operand.vmem [shape: f32[26,8], index: 0, kind: input, shape index: {}]   ;;  %s251_s1 = inlined_call_operand.vmem [shape: f32[8,128], index: 1, kind: input, shape index: {}]   ;;  %s252_s2 = inlined_call_operand.vmem [shape: f32[26,128], index: 2, kind: input, shape index: {}]   ;;  %s253_s3 = inlined_call_operand.hbm [shape: f32[26,128], index: 3, kind: output, shape index: {}]  }
   0x1   :  { %v19_v0 = vld [vmem:[%s251_s1] sm:$0xff]  ;;  %v17_v2 = vld [vmem:[%s250_s0 + $0x10] sm:$0xff]  ;;  %v16_v3 = vld [vmem:[%s250_s0 + $0x8] sm:$0xff] }
   0x2   :  { %v15_v1 = vld [vmem:[%s250_s0] sm:$0xff]  ;;  %151 = vmatprep.subr.mxu0 %v19_v0  ;;  %159 = vmatprep.subr.mxu1 %v19_v0  ;;  %v18_v4 = vld [vmem:[%s250_s0 + $0x18] sm:$0x3] }
   0x3   :  { %152 = vmatpush3.msra.mxu0 %v19_v0  ;;  %160 = vmatpush3.msra.mxu1 %v19_v0 }
   0x4   :  { %8 = vsyncpa [#allocation3], 0  ;;  %153 = vmatprep.mubr.msk.f32.mxu0 %vm24_vm0, %v15_v1  ;;  %156 = vmatprep.mubr.msk.f32.mxu1 %vm24_vm0, %v17_v2  ;;  %v21_v5 = vld [vmem:[%s252_s2 + $0x8] sm:$0xff]  ;;  %v23_v6 = vld [vmem:[%s252_s2 + $0x18] sm:$0x3]  ;;  %s188_s25 = smov [#allocation2]  }
   0x5   :  { %154 = vmatmul.mubr.msk.f32.vlgmr.msra.gmra.mrb[0].mxu0 %vm24_vm0, %v16_v3  ;;  %157 = vmatmul.mubr.msk.f32.vlgmr.msra.gmra.mrb[0].mxu1 %vm24_vm0, %v18_v4  ;;  %s131_s26 = sshll.u32 %s188_s25, 4  ;;  %v20_v7 = vld [vmem:[%s252_s2] sm:$0xff]  ;;  %v22_v8 = vld [vmem:[%s252_s2 + $0x10] sm:$0xff]  ;;  %s132_s26 = int_to_ptr.vmem [resolvable:$true] %s131_s26 }
   0x6   :  { %s164_s30 = scalar_lea.vmem %s132_s26, 512  ;;  %p169_p1 = scmp.lt.s32.totalorder %s132_s26, %s132_s26 }
   0x7   :  { %p165_p0 = scmp.ne.s32.totalorder %s132_s26, %s164_s30  ;;  %p170_p2 = scmp.lt.s32.totalorder %s164_s30, %s164_s30 }
   0x9   :  { %p171_p3 = por %p170_p2, %p169_p1 }
   0xb   :  { %p172_p4 = pnand %p171_p3, %p165_p0 }
  0xd8   :  { %v155_v9 = vpop.f32.mrb[0].mxu0  ;;  %v158_v10 = vpop.f32.mrb[0].mxu1 }
  0xd9   :  { %v109_v11 = vadd.f32 %v155_v9, %v21_v5  ;;  %v119_v12 = vadd.f32 %v158_v10, %v23_v6  ;;  %v103_v13 = vpop.f32.mrb[1].mxu0  ;;  %v113_v14 = vpop.f32.mrb[1].mxu1 }
  0xda   :  { %v104_v15 = vadd.f32 %v103_v13, %v20_v7  ;;  %v114_v16 = vadd.f32 %v113_v14, %v22_v8 }
  0xdb   :  { %123 = vst [vmem:[#allocation2 + $0x8] sm:$0xff] %v109_v11  ;;  %125 = vst [vmem:[#allocation2 + $0x18] sm:$0x3] %v119_v12 }
  0xdc   :  { %122 = vst [vmem:[#allocation2] sm:$0xff] %v104_v15  ;;  %124 = vst [vmem:[#allocation2 + $0x10] sm:$0xff] %v114_v16 }
  0xdd   :  { %175 = shalt.err (!%p172_p4)
}
  0xde   :  { %s176_s5 = scalar_lea.hbm %s253_s3, 512 }
  0xdf   :  { %p177_p5 = scmp.ne.s32.totalorder %s253_s3, %s176_s5  ;;  %p180_p6 = scmp.lt.u32.totalorder %s176_s5, %s253_s3 }
  0xe1   :  { %p182_p7 = pnand %p180_p6, %p177_p5 }
  0xe3   :  { %185 = shalt.err (!%p182_p7)
}
  0xe4   :  { %s189_s10 = smov 128   ;;  %s190_s11 = smov 8  }
  0xe5   :  { %137 = dma.vmem_to_hbm [thread:$0]  %s132_s26, 512, %s253_s3, [#allocation3], %s189_s10, %s189_s10, %s190_s11  }
  0xe6   :  { %186 = dma.done.wait [#allocation3], 512  }
  0xe7   :  { %187 = vsyncadd [#allocation3], 4294966784 }
  0xe8   :  { %141 = vsyncpa [#allocation3], 1 }

</bundles_post_ra>
